<compile_context>
chip_gen: v5e
topology: v5e:2x2
jax: 0.10.0
libtpu: 0.0.40
codegen_flags: <defaults>
</compile_context>

<pallas_src>
import jax
import jax.numpy as jnp
from jax.experimental import pallas as pl
from jax.experimental.pallas import tpu as pltpu


def _round_up(n, m):
    return ((n + m - 1) // m) * m


def _ode_func_kernel(t_ref, x_ref, w1t_ref, w1x_ref, b1_ref, w2_ref, b2_ref, o_ref):
    # t_ref: (TB, 1)      x_ref: (TB, D)
    # w1t_ref: (1, Hp)    w1x_ref: (D, Hp)   b1_ref: (1, Hp)
    # w2_ref: (Hp, D)     b2_ref: (1, D)     o_ref: (TB, D)
    x = x_ref[...].astype(jnp.float32)
    t = t_ref[...].astype(jnp.float32)

    # cat([t, x], -1) @ W1  ==  x @ W1[1:]  +  t * W1[:1]
    # Rank-1 time term is a VPU broadcast multiply (free VALU slot) rather than
    # a latency-dominated K=1 MXU matmul.
    t_term = t * w1t_ref[...] + b1_ref[...]                        # (TB, Hp)
    pre1 = jnp.dot(x, w1x_ref[...],
                   preferred_element_type=jnp.float32) + t_term    # (TB, Hp)
    h = jnp.tanh(pre1)                                             # EUP
    out = jnp.dot(h, w2_ref[...],
                  preferred_element_type=jnp.float32) + b2_ref[...]  # (TB, D)
    o_ref[...] = out.astype(o_ref.dtype)


def ode_func_forward(t, x, params, *, tile_b=4096):
    """dx/dt = MLP(cat([t, x], -1)).

    t: (B,), x: (B, D)  ->  (B, D) with x's dtype.
    """
    B, D = x.shape
    w1, b1, w2, b2 = params["w1"], params["b1"], params["w2"], params["b2"]
    H = w1.shape[1]

    # Hidden dim lane-padded for internal compute only (zeros -> exact result).
    H_pad = _round_up(max(H, 128), 128)

    # Batch tile: multiple of 8 sublanes; ragged last block handled by Pallas.
    B8 = _round_up(B, 8)
    TB = min(_round_up(max(tile_b, 8), 8), B8)
    # v7x megacore: keep >= 2 parallel tiles when the batch allows it.
    if B8 > 8 and pl.cdiv(B, TB) < 2:
        TB = _round_up(pl.cdiv(B8, 2), 8)
    n_tiles = pl.cdiv(B, TB)

    t2 = t.reshape(B, 1)  # metadata-only reshape; dtype preserved

    # Zero-padded weights (trace-time, tiny).  Only the hidden (contraction)
    # dim is padded; padded rows of w2 multiply zero-valued tanh(0)=0? No --
    # padded columns of W1/b1 are zero, so the padded hidden activations are
    # tanh(0)=0, and the matching padded rows of w2 are zero as well: exact.
    f32 = jnp.float32
    w1t = jnp.pad(w1[:1, :].astype(f32), ((0, 0), (0, H_pad - H)))       # (1, Hp)
    w1x = jnp.pad(w1[1:, :].astype(f32), ((0, 0), (0, H_pad - H)))       # (D, Hp)
    b1p = jnp.pad(b1.reshape(1, H).astype(f32), ((0, 0), (0, H_pad - H)))  # (1, Hp)
    w2p = jnp.pad(w2.astype(f32), ((0, H_pad - H), (0, 0)))              # (Hp, D)
    b2p = b2.reshape(1, D).astype(f32)                                   # (1, D)

    batch_spec = lambda last: pl.BlockSpec((TB, last), lambda i: (i, 0))
    resident = lambda shape: pl.BlockSpec(shape, lambda i: (0, 0))

    out = pl.pallas_call(
        _ode_func_kernel,
        out_shape=jax.ShapeDtypeStruct((B, D), x.dtype),
        grid=(n_tiles,),
        in_specs=[
            batch_spec(1),            # t
            batch_spec(D),            # x
            resident((1, H_pad)),     # w1t
            resident((D, H_pad)),     # w1x
            resident((1, H_pad)),     # b1
            resident((H_pad, D)),     # w2
            resident((1, D)),         # b2
        ],
        out_specs=pl.BlockSpec((TB, D), lambda i: (i, 0)),
        compiler_params=pltpu.CompilerParams(
            dimension_semantics=("parallel",),
        ),
    )(t2, x, w1t, w1x, b1p, w2p, b2p)

    return out


def init_params(key, state_dim, hidden_dim):
    k1, k2, k3, k4 = jax.random.split(key, 4)
    in_dim = state_dim + 1
    lim1 = 1.0 / jnp.sqrt(in_dim)
    lim2 = 1.0 / jnp.sqrt(hidden_dim)
    return {
        "w1": jax.random.uniform(k1, (in_dim, hidden_dim), jnp.float32, -lim1, lim1),
        "b1": jax.random.uniform(k2, (hidden_dim,), jnp.float32, -lim1, lim1),
        "w2": jax.random.uniform(k3, (hidden_dim, state_dim), jnp.float32, -lim2, lim2),
        "b2": jax.random.uniform(k4, (state_dim,), jnp.float32, -lim2, lim2),
    }


def _reference(t, x, params):
    tx = jnp.concatenate([t[..., None], x], axis=-1)
    h = jnp.tanh(tx @ params["w1"] + params["b1"])
    return h @ params["w2"] + params["b2"]


if __name__ == "__main__":
    D, H = 8, 32  # state dim, hidden dim
    key = jax.random.PRNGKey(0)
    kp, kt, kx = jax.random.split(key, 3)
    params = init_params(kp, D, H)

    # Case 1: small batch, single tile.
    B = 8
    t = jax.random.uniform(kt, (B,), jnp.float32)
    x = jax.random.normal(kx, (B, D), jnp.float32)
    out = jax.block_until_ready(ode_func_forward(t, x, params))
    ref = _reference(t, x, params)
    assert out.shape == (B, D) and out.dtype == x.dtype
    assert jnp.allclose(out, ref, atol=1e-5, rtol=1e-5)

    # Case 2: non-multiple-of-tile batch, small tile -> 3-tile grid with a
    # ragged last block (exercises Pallas boundary masking, no wrapper pads).
    B2 = 19
    t2 = jax.random.uniform(kt, (B2,), jnp.float32)
    x2 = jax.random.normal(kx, (B2, D), jnp.float32)
    out2 = jax.block_until_ready(ode_func_forward(t2, x2, params, tile_b=8))
    ref2 = _reference(t2, x2, params)
    assert out2.shape == (B2, D)
    assert jnp.allclose(out2, ref2, atol=1e-5, rtol=1e-5)

    # Case 3: same batch, default tile -> megacore split (2 tiles) + ragged
    # last block.
    out3 = jax.block_until_ready(ode_func_forward(t2, x2, params))
    assert out3.shape == (B2, D)
    assert jnp.allclose(out3, ref2, atol=1e-5, rtol=1e-5)

    print("KERNEL_OK")
</pallas_src>

<mosaic_0001>
module attributes {stable_mosaic.version = 11 : i64} {
  func.func @_ode_func_kernel(%arg0: i32, %arg1: memref<8x1xf32, #tpu.memory_space<vmem>>, %arg2: memref<8x8xf32, #tpu.memory_space<vmem>>, %arg3: memref<1x128xf32, #tpu.memory_space<vmem>>, %arg4: memref<8x128xf32, #tpu.memory_space<vmem>>, %arg5: memref<1x128xf32, #tpu.memory_space<vmem>>, %arg6: memref<128x8xf32, #tpu.memory_space<vmem>>, %arg7: memref<1x8xf32, #tpu.memory_space<vmem>>, %arg8: memref<8x8xf32, #tpu.memory_space<vmem>>) attributes {dimension_semantics = [#tpu.dimension_semantics<parallel>], iteration_bounds = array<i64: 1>, scalar_prefetch = 0 : i64, scratch_operands = 0 : i64, tpu.core_type = #tpu.core_type<tc>, window_params = [{transform_indices = @transform_0, window_bounds = array<i64: 8, 1>}, {transform_indices = @transform_1, window_bounds = array<i64: 8, 8>}, {pipeline_mode = #tpu.pipeline_mode<synchronous>, transform_indices = @transform_2, window_bounds = array<i64: 1, 128>}, {pipeline_mode = #tpu.pipeline_mode<synchronous>, transform_indices = @transform_3, window_bounds = array<i64: 8, 128>}, {pipeline_mode = #tpu.pipeline_mode<synchronous>, transform_indices = @transform_4, window_bounds = array<i64: 1, 128>}, {pipeline_mode = #tpu.pipeline_mode<synchronous>, transform_indices = @transform_5, window_bounds = array<i64: 128, 8>}, {pipeline_mode = #tpu.pipeline_mode<synchronous>, transform_indices = @transform_6, window_bounds = array<i64: 1, 8>}, {transform_indices = @transform_7, window_bounds = array<i64: 8, 8>}]} {
    %c0 = arith.constant 0 : index
    %c0_0 = arith.constant 0 : index
    %0 = vector.load %arg2[%c0, %c0_0] : memref<8x8xf32, #tpu.memory_space<vmem>>, vector<8x8xf32>
    %c0_1 = arith.constant 0 : index
    %c0_2 = arith.constant 0 : index
    %1 = vector.load %arg1[%c0_1, %c0_2] : memref<8x1xf32, #tpu.memory_space<vmem>>, vector<8x1xf32>
    %c0_3 = arith.constant 0 : index
    %c0_4 = arith.constant 0 : index
    %2 = vector.load %arg3[%c0_3, %c0_4] : memref<1x128xf32, #tpu.memory_space<vmem>>, vector<1x128xf32>
    %3 = vector.broadcast %1 : vector<8x1xf32> to vector<8x128xf32>
    %4 = vector.broadcast %2 : vector<1x128xf32> to vector<8x128xf32>
    %5 = arith.mulf %3, %4 : vector<8x128xf32>
    %c0_5 = arith.constant 0 : index
    %c0_6 = arith.constant 0 : index
    %6 = vector.load %arg5[%c0_5, %c0_6] : memref<1x128xf32, #tpu.memory_space<vmem>>, vector<1x128xf32>
    %7 = vector.broadcast %6 : vector<1x128xf32> to vector<8x128xf32>
    %8 = arith.addf %5, %7 : vector<8x128xf32>
    %c0_7 = arith.constant 0 : index
    %c0_8 = arith.constant 0 : index
    %9 = vector.load %arg4[%c0_7, %c0_8] : memref<8x128xf32, #tpu.memory_space<vmem>>, vector<8x128xf32>
    %cst = arith.constant dense<0.000000e+00> : vector<8x128xf32>
    %10 = tpu.matmul %0, %9, %cst {dimension_numbers = #tpu.dot_dimension_numbers<[1], [0], [0], [1], [0, 0, 1, 1], [], []>} : vector<8x8xf32>, vector<8x128xf32>, vector<8x128xf32> -> vector<8x128xf32>
    %11 = arith.addf %10, %8 : vector<8x128xf32>
    %12 = math.tanh %11 : vector<8x128xf32>
    %c0_9 = arith.constant 0 : index
    %c0_10 = arith.constant 0 : index
    %13 = vector.load %arg6[%c0_9, %c0_10] : memref<128x8xf32, #tpu.memory_space<vmem>>, vector<128x8xf32>
    %cst_11 = arith.constant dense<0.000000e+00> : vector<8x8xf32>
    %14 = tpu.matmul %12, %13, %cst_11 {dimension_numbers = #tpu.dot_dimension_numbers<[1], [0], [0], [1], [0, 0, 1, 1], [], []>} : vector<8x128xf32>, vector<128x8xf32>, vector<8x8xf32> -> vector<8x8xf32>
    %c0_12 = arith.constant 0 : index
    %c0_13 = arith.constant 0 : index
    %15 = vector.load %arg7[%c0_12, %c0_13] : memref<1x8xf32, #tpu.memory_space<vmem>>, vector<1x8xf32>
    %16 = vector.broadcast %15 : vector<1x8xf32> to vector<8x8xf32>
    %17 = arith.addf %14, %16 : vector<8x8xf32>
    %c0_14 = arith.constant 0 : index
    %c0_15 = arith.constant 0 : index
    %18 = vector.load %arg8[%c0_14, %c0_15] : memref<8x8xf32, #tpu.memory_space<vmem>>, vector<8x8xf32>
    tpu.vector_store %arg8[%c0_14, %c0_15], %17 {strides = array<i32>} : memref<8x8xf32, #tpu.memory_space<vmem>>, vector<8x8xf32>,
    return
  }
  func.func @transform_0(%arg0: i32) -> (i32, i32) {
    %c0_i32 = arith.constant 0 : i32
    %c0_i32_0 = arith.constant 0 : i32
    return %arg0, %c0_i32 : i32, i32
  }
  func.func @transform_1(%arg0: i32) -> (i32, i32) {
    %c0_i32 = arith.constant 0 : i32
    %c0_i32_0 = arith.constant 0 : i32
    return %arg0, %c0_i32 : i32, i32
  }
  func.func @transform_2(%arg0: i32) -> (i32, i32) {
    %c0_i32 = arith.constant 0 : i32
    %c0_i32_0 = arith.constant 0 : i32
    %c0_i32_1 = arith.constant 0 : i32
    return %c0_i32, %c0_i32_0 : i32, i32
  }
  func.func @transform_3(%arg0: i32) -> (i32, i32) {
    %c0_i32 = arith.constant 0 : i32
    %c0_i32_0 = arith.constant 0 : i32
    %c0_i32_1 = arith.constant 0 : i32
    return %c0_i32, %c0_i32_0 : i32, i32
  }
  func.func @transform_4(%arg0: i32) -> (i32, i32) {
    %c0_i32 = arith.constant 0 : i32
    %c0_i32_0 = arith.constant 0 : i32
    %c0_i32_1 = arith.constant 0 : i32
    return %c0_i32, %c0_i32_0 : i32, i32
  }
  func.func @transform_5(%arg0: i32) -> (i32, i32) {
    %c0_i32 = arith.constant 0 : i32
    %c0_i32_0 = arith.constant 0 : i32
    %c0_i32_1 = arith.constant 0 : i32
    return %c0_i32, %c0_i32_0 : i32, i32
  }
  func.func @transform_6(%arg0: i32) -> (i32, i32) {
    %c0_i32 = arith.constant 0 : i32
    %c0_i32_0 = arith.constant 0 : i32
    %c0_i32_1 = arith.constant 0 : i32
    return %c0_i32, %c0_i32_0 : i32, i32
  }
  func.func @transform_7(%arg0: i32) -> (i32, i32) {
    %c0_i32 = arith.constant 0 : i32
    %c0_i32_0 = arith.constant 0 : i32
    return %arg0, %c0_i32 : i32, i32
  }
}

</mosaic_0001>

<bundles_post_ra>
// kernel: tpu_custom_call.1
= control target key start
LH: loop header
LB: loop body
LE: loop exit
PB: predicated region body
PF: predicated region fallthrough
CT: control target
= control target key end

     0   :  { %vm45_vm0 = vcmask 64512   ;;  %v162_v3 = vmov 0   ;;  %s275_s0 = inlined_call_operand.vmem [shape: f32[8,1], index: 0, kind: input, shape index: {}]   ;;  %s276_s1 = inlined_call_operand.vmem [shape: f32[8,8], index: 1, kind: input, shape index: {}]   ;;  %s277_s2 = inlined_call_operand.vmem [shape: f32[1,128], index: 2, kind: input, shape index: {}]   ;;  %s278_s3 = inlined_call_operand.vmem [shape: f32[8,128], index: 3, kind: input, shape index: {}]   ;;  %s279_s4 = inlined_call_operand.vmem [shape: f32[1,128], index: 4, kind: input, shape index: {}]   ;;  %s280_s5 = inlined_call_operand.vmem [shape: f32[128,8], index: 5, kind: input, shape index: {}]   ;;  %s281_s6 = inlined_call_operand.vmem [shape: f32[1,8], index: 6, kind: input, shape index: {}]   ;;  %s282_s7 = inlined_call_operand.hbm [shape: f32[8,8], index: 7, kind: output, shape index: {}]  }
   0x1   :  { %v44_v0 = vld [vmem:[%s278_s3] sm:$0xff]  ;;  %130 = vset.pattern.permute.xlu0 %v162_v3  ;;  %v85_v4 = vld [vmem:[%s280_s5 + $0x78] sm:$0xff]  ;;  %v84_v5 = vld [vmem:[%s280_s5 + $0x70] sm:$0xff] }
   0x2   :  { %v27_v1 = vld [vmem:[%s276_s1] sm:$0xff]  ;;  %64 = vmatpush.msra.mxu0 %v44_v0  ;;  %90 = vmatpush.msra.mxu1 %v85_v4  ;;  %v83_v6 = vld [vmem:[%s280_s5 + $0x68] sm:$0xff] }
   0x3   :  { %v28_v2 = vld [vmem:[%s275_s0] sm:$0xff]  ;;  %127 = vmatmul.msk.f32.vlgmr.msra.gmra.mxu0 %vm45_vm0, %v27_v1 }
   0x4   :  { %32 = vperm.xlu0 %130, %v28_v2   ;;  %91 = vmatpush.msra.mxu1 %v84_v5 }
   0x5   :  { %12 = vsyncpa [#allocation3], 0  ;;  %v82_v7 = vld [vmem:[%s280_s5 + $0x60] sm:$0xff]  ;;  %v81_v8 = vld [vmem:[%s280_s5 + $0x58] sm:$0xff]  ;;  %s163_s15 = smov [#allocation2]   ;;  %s118_s18 = sshll.u32 %s282_s7, 4  ;;  %s119_s18 = int_to_ptr.hbm [resolvable:$true] %s118_s18 }
   0x6   :  { %92 = vmatpush.msra.mxu1 %v83_v6  ;;  %v80_v9 = vld [vmem:[%s280_s5 + $0x50] sm:$0xff]  ;;  %v79_v10 = vld [vmem:[%s280_s5 + $0x48] sm:$0xff]  ;;  %v78_v11 = vld [vmem:[%s280_s5 + $0x40] sm:$0xff]  ;;  %s116_s16 = sshll.u32 %s163_s15, 4  ;;  %s117_s16 = int_to_ptr.vmem [resolvable:$true] %s116_s16 }
   0x7   :  { %v77_v12 = vld [vmem:[%s280_s5 + $0x38] sm:$0xff]  ;;  %v76_v13 = vld [vmem:[%s280_s5 + $0x30] sm:$0xff]  ;;  %v75_v14 = vld [vmem:[%s280_s5 + $0x28] sm:$0xff] }
   0x8   :  { %93 = vmatpush.msra.mxu1 %v82_v7  ;;  %v74_v15 = vld [vmem:[%s280_s5 + $0x20] sm:$0xff]  ;;  %v73_v16 = vld [vmem:[%s280_s5 + $0x18] sm:$0xff]  ;;  %v72_v17 = vld [vmem:[%s280_s5 + $0x10] sm:$0xff] }
   0x9   :  { %v71_v18 = vld [vmem:[%s280_s5 + $0x8] sm:$0xff]  ;;  %v70_v19 = vld [vmem:[%s280_s5] sm:$0xff] }
   0xa   :  { %94 = vmatpush.msra.mxu1 %v81_v8  ;;  %v131_v20 = vld [vmem:[%s277_s2] ss:$0 sm:$0xff] }
   0xb   :  { %v132_v23 = vld [vmem:[%s279_s4] ss:$0 sm:$0xff] }
   0xc   :  { %95 = vmatpush.msra.mxu1 %v80_v9  ;;  %v133_v28 = vld [vmem:[%s281_s6] ss:$0 sm:$0xff] }
   0xe   :  { %96 = vmatpush.msra.mxu1 %v79_v10 }
  0x10   :  { %97 = vmatpush.msra.mxu1 %v78_v11 }
  0x12   :  { %98 = vmatpush.msra.mxu1 %v77_v12 }
  0x14   :  { %99 = vmatpush.msra.mxu1 %v76_v13 }
  0x16   :  { %100 = vmatpush.msra.mxu1 %v75_v14 }
  0x18   :  { %101 = vmatpush.msra.mxu1 %v74_v15 }
  0x1a   :  { %102 = vmatpush.msra.mxu1 %v73_v16 }
  0x1c   :  { %103 = vmatpush.msra.mxu1 %v72_v17 }
  0x1e   :  { %104 = vmatpush.msra.mxu1 %v71_v18 }
  0x20   :  { %105 = vmatpush.msra.mxu1 %v70_v19 }
  0x76   :  { %v33_v21 = vpop.permute.xlu0 %32 }
  0x77   :  { %v38_v22 = vmul.f32 %v131_v20, %v33_v21 }
  0x79   :  { %v43_v24 = vadd.f32 %v132_v23, %v38_v22 }
  0x80   :  { %v66_v25 = vpop.f32.mrf.mxu0 }
  0x81   :  { %v67_v26 = vadd.f32 %v66_v25, %v43_v24 }
  0x83   :  { %134 = vtanh.f32 %v67_v26 }
  0x89   :  { %v135_v27 = vpop.eup %134 }
  0x8a   :  { %106 = vmatmul.f32.vlgmr.msra.gmra.mxu1 %v135_v27 }
 0x107   :  { %v107_v29 = vpop.f32.mrf.mxu1 }
 0x108   :  { %v108_v30 = vadd.f32 %v133_v28, %v107_v29 }
 0x10a   :  { %110 = vst.msk [vmem:[#allocation2] sm:$0xff] %vm45_vm0, %v108_v30 }
 0x10b   :  { %121 = dma.vmem_to_hbm [thread:$0]  %s117_s16, 128, %s119_s18, [#allocation3]  }
 0x10c   :  { %160 = dma.done.wait [#allocation3], 128  }
 0x10d   :  { %161 = vsyncadd [#allocation3], 4294967168 }
 0x10e   :  { %126 = vsyncpa [#allocation3], 1 }

</bundles_post_ra>
